<compile_context>
chip_gen: v7x
topology: tpu7x:2x2x1
jax: 0.10.0
libtpu: 0.0.40
codegen_flags: <defaults>
</compile_context>

<pallas_src>
import functools

import jax
import jax.numpy as jnp
import numpy as np
from jax.experimental import pallas as pl
from jax.experimental.pallas import tpu as pltpu


def _round_up(x, m):
    return ((x + m - 1) // m) * m


# ----------------------------------------------------------------------------
# Pass 1: per-tile partial per-channel sum / sum-of-squares of z = W @ x.
# ----------------------------------------------------------------------------
def _stats_kernel(x_ref, w_ref, psum_ref, psumsq_ref, *, hw, tile_hw, need_mask):
    x = x_ref[0]                                                      # (Cin, tile_hw)
    z = jnp.dot(w_ref[...], x, preferred_element_type=jnp.float32)    # (Cout, tile_hw)
    if need_mask:
        # Zero out lanes past the true spatial extent of the last tile so the
        # partial sums are exact.
        t = pl.program_id(1)
        col = t * tile_hw + jax.lax.broadcasted_iota(jnp.int32, z.shape, 1)
        z = jnp.where(col < hw, z, 0.0)
    psum_ref[0, 0, :, :] = jnp.sum(z, axis=1, keepdims=True)          # (Cout, 1)
    psumsq_ref[0, 0, :, :] = jnp.sum(z * z, axis=1, keepdims=True)    # (Cout, 1)


# ----------------------------------------------------------------------------
# Pass 2: recompute z = W @ x and apply the folded BN affine (one FMA/elem).
# ----------------------------------------------------------------------------
def _conv_bn_kernel(x_ref, w_ref, scale_ref, shift_ref, o_ref):
    x = x_ref[0]                                                      # (Cin, tile_hw)
    z = jnp.dot(w_ref[...], x, preferred_element_type=jnp.float32)    # (Cout, tile_hw)
    o_ref[0] = (z * scale_ref[...] + shift_ref[...]).astype(o_ref.dtype)


# ----------------------------------------------------------------------------
# Wrapper: ResBase.forward(x) for kernel_size=1, padding=0 (module defaults).
# ----------------------------------------------------------------------------
def res_base_forward(x_nchw, conv_w, conv_b, bn_gamma, bn_beta, *, eps=1e-5,
                     tile_hw=2048):
    # TODO(synk): only kernel_size=1 / padding=0 (the module defaults) are
    # implemented; a general KxK conv would need an im2col or halo path.
    N, Cin, H, W = x_nchw.shape
    Cout = conv_w.shape[0]
    assert conv_w.shape == (Cout, Cin, 1, 1)

    HW = H * W
    M = N * HW
    tile_hw = min(tile_hw, _round_up(HW, 128))
    G = pl.cdiv(HW, tile_hw)
    need_mask = (HW % tile_hw) != 0

    # Free reshapes only — no transposes, NCHW order preserved in memory.
    x3d = x_nchw.reshape(N, Cin, HW)
    w2d = conv_w.reshape(Cout, Cin)

    grid = (N, G)
    par = pltpu.CompilerParams(dimension_semantics=("parallel", "parallel"))

    # --- pass 1: partial per-channel statistics (no y written to HBM) -------
    stats_body = functools.partial(
        _stats_kernel, hw=HW, tile_hw=tile_hw, need_mask=need_mask)
    psum, psumsq = pl.pallas_call(
        stats_body,
        out_shape=(
            jax.ShapeDtypeStruct((N, G, Cout, 1), jnp.float32),
            jax.ShapeDtypeStruct((N, G, Cout, 1), jnp.float32),
        ),
        grid_spec=pltpu.PrefetchScalarGridSpec(
            num_scalar_prefetch=0,
            grid=grid,
            in_specs=[
                pl.BlockSpec((1, Cin, tile_hw), lambda n, t: (n, 0, t)),
                pl.BlockSpec((Cout, Cin), lambda n, t: (0, 0)),
            ],
            out_specs=(
                pl.BlockSpec((1, 1, Cout, 1), lambda n, t: (n, t, 0, 0)),
                pl.BlockSpec((1, 1, Cout, 1), lambda n, t: (n, t, 0, 0)),
            ),
        ),
        compiler_params=par,
    )(x3d, w2d)

    # --- tiny (Cout,)-sized combine + BN fold in plain JAX ------------------
    total = jnp.sum(psum, axis=(0, 1, 3))        # (Cout,)
    total_sq = jnp.sum(psumsq, axis=(0, 1, 3))   # (Cout,)
    mean = total / M
    # Biased variance (as BatchNorm uses for normalization).  E[z^2]-E[z]^2 is
    # clamped at 0 to guard against cancellation producing a tiny negative.
    var = jnp.maximum(total_sq / M - mean * mean, 0.0)
    inv_std = jax.lax.rsqrt(var + eps)
    g_inv = bn_gamma * inv_std
    scale = g_inv.reshape(Cout, 1)
    shift = (bn_beta - mean * g_inv).reshape(Cout, 1)
    # conv_b is intentionally unused: the bias is absorbed exactly by the
    # train-mode BN mean subtraction.

    # --- pass 2: recompute conv + apply folded affine, lane-dense store -----
    out3d = pl.pallas_call(
        _conv_bn_kernel,
        out_shape=jax.ShapeDtypeStruct((N, Cout, HW), jnp.float32),
        grid_spec=pltpu.PrefetchScalarGridSpec(
            num_scalar_prefetch=0,
            grid=grid,
            in_specs=[
                pl.BlockSpec((1, Cin, tile_hw), lambda n, t: (n, 0, t)),
                pl.BlockSpec((Cout, Cin), lambda n, t: (0, 0)),
                pl.BlockSpec((Cout, 1), lambda n, t: (0, 0)),
                pl.BlockSpec((Cout, 1), lambda n, t: (0, 0)),
            ],
            out_specs=pl.BlockSpec((1, Cout, tile_hw), lambda n, t: (n, 0, t)),
        ),
        compiler_params=par,
    )(x3d, w2d, scale, shift)

    return out3d.reshape(N, Cout, H, W)


def _reference(x_nchw, conv_w, conv_b, bn_gamma, bn_beta, eps=1e-5):
    """Pure-JAX reference of ResBase.forward (train-mode BN) for validation."""
    N, Cin, H, W = x_nchw.shape
    Cout = conv_w.shape[0]
    x2d = jnp.transpose(x_nchw, (0, 2, 3, 1)).reshape(-1, Cin)
    y = x2d @ conv_w.reshape(Cout, Cin).T + conv_b[None, :]
    mean = y.mean(axis=0, keepdims=True)
    var = ((y - mean) ** 2).mean(axis=0, keepdims=True)  # biased, as BN uses
    out = (y - mean) / jnp.sqrt(var + eps) * bn_gamma[None, :] + bn_beta[None, :]
    return jnp.transpose(out.reshape(N, H, W, Cout), (0, 3, 1, 2))


if __name__ == "__main__":
    # Small shapes consistent with the module: batch=2, in_channels=4,
    # out_channels=8, spatial=16x16, kernel_size=1, padding=0.
    N, Cin, Cout, H, W = 2, 4, 8, 16, 16

    key = jax.random.PRNGKey(0)
    kx, kw, kb = jax.random.split(key, 3)

    x = jax.random.normal(kx, (N, Cin, H, W), dtype=jnp.float32)

    # Deterministic synthetic parameters (shapes from nn.Conv2d / nn.BatchNorm2d).
    fan_in = Cin * 1 * 1
    bound = 1.0 / np.sqrt(fan_in)
    conv_w = jax.random.uniform(kw, (Cout, Cin, 1, 1), jnp.float32, -bound, bound)
    conv_b = jax.random.uniform(kb, (Cout,), jnp.float32, -bound, bound)
    bn_gamma = jnp.ones((Cout,), jnp.float32)   # BatchNorm2d default weight
    bn_beta = jnp.zeros((Cout,), jnp.float32)   # BatchNorm2d default bias

    out = res_base_forward(x, conv_w, conv_b, bn_gamma, bn_beta)
    out = jax.block_until_ready(out)

    ref = _reference(x, conv_w, conv_b, bn_gamma, bn_beta)
    np.testing.assert_allclose(np.asarray(out), np.asarray(ref), rtol=1e-4, atol=1e-4)

    print("KERNEL_OK")
</pallas_src>

<mosaic_0001>
module attributes {stable_mosaic.version = 11 : i64} {
  func.func @_stats_kernel(%arg0: i32, %arg1: i32, %arg2: memref<1x4x256xf32, #tpu.memory_space<vmem>>, %arg3: memref<8x4xf32, #tpu.memory_space<vmem>>, %arg4: memref<1x1x8x1xf32, #tpu.memory_space<vmem>>, %arg5: memref<1x1x8x1xf32, #tpu.memory_space<vmem>>) attributes {dimension_semantics = [#tpu.dimension_semantics<parallel>, #tpu.dimension_semantics<parallel>], iteration_bounds = array<i64: 2, 1>, scalar_prefetch = 0 : i64, scratch_operands = 0 : i64, tpu.core_type = #tpu.core_type<tc>, window_params = [{transform_indices = @transform_0, window_bounds = array<i64: 1, 4, 256>}, {pipeline_mode = #tpu.pipeline_mode<synchronous>, transform_indices = @transform_1, window_bounds = array<i64: 8, 4>}, {transform_indices = @transform_2, window_bounds = array<i64: 1, 1, 8, 1>}, {transform_indices = @transform_3, window_bounds = array<i64: 1, 1, 8, 1>}]} {
    %c0 = arith.constant 0 : index
    %c0_0 = arith.constant 0 : index
    %c0_1 = arith.constant 0 : index
    %0 = vector.load %arg2[%c0, %c0_0, %c0_1] : memref<1x4x256xf32, #tpu.memory_space<vmem>>, vector<1x4x256xf32>
    %1 = vector.shape_cast %0 : vector<1x4x256xf32> to vector<4x256xf32>
    %c0_2 = arith.constant 0 : index
    %c0_3 = arith.constant 0 : index
    %2 = vector.load %arg3[%c0_2, %c0_3] : memref<8x4xf32, #tpu.memory_space<vmem>>, vector<8x4xf32>
    %cst = arith.constant dense<0.000000e+00> : vector<8x256xf32>
    %3 = tpu.matmul %2, %1, %cst {dimension_numbers = #tpu.dot_dimension_numbers<[1], [0], [0], [1], [0, 0, 1, 1], [], []>} : vector<8x4xf32>, vector<4x256xf32>, vector<8x256xf32> -> vector<8x256xf32>
    %cst_4 = arith.constant dense<0.000000e+00> : vector<8xf32>
    %4 = vector.multi_reduction <add>, %3, %cst_4 [1] : vector<8x256xf32> to vector<8xf32>
    %5 = vector.shape_cast %4 : vector<8xf32> to vector<8x1xf32>
    %c0_5 = arith.constant 0 : index
    %c0_6 = arith.constant 0 : index
    %c0_7 = arith.constant 0 : index
    %c0_8 = arith.constant 0 : index
    %6 = vector.load %arg4[%c0_5, %c0_6, %c0_7, %c0_8] : memref<1x1x8x1xf32, #tpu.memory_space<vmem>>, vector<1x1x8x1xf32>
    %7 = vector.shape_cast %6 : vector<1x1x8x1xf32> to vector<8x1xf32>
    %8 = vector.shape_cast %5 : vector<8x1xf32> to vector<1x1x8x1xf32>
    tpu.vector_store %arg4[%c0_5, %c0_6, %c0_7, %c0_8], %8 {strides = array<i32>} : memref<1x1x8x1xf32, #tpu.memory_space<vmem>>, vector<1x1x8x1xf32>,
    %9 = arith.mulf %3, %3 : vector<8x256xf32>
    %cst_9 = arith.constant dense<0.000000e+00> : vector<8xf32>
    %10 = vector.multi_reduction <add>, %9, %cst_9 [1] : vector<8x256xf32> to vector<8xf32>
    %11 = vector.shape_cast %10 : vector<8xf32> to vector<8x1xf32>
    %c0_10 = arith.constant 0 : index
    %c0_11 = arith.constant 0 : index
    %c0_12 = arith.constant 0 : index
    %c0_13 = arith.constant 0 : index
    %12 = vector.load %arg5[%c0_10, %c0_11, %c0_12, %c0_13] : memref<1x1x8x1xf32, #tpu.memory_space<vmem>>, vector<1x1x8x1xf32>
    %13 = vector.shape_cast %12 : vector<1x1x8x1xf32> to vector<8x1xf32>
    %14 = vector.shape_cast %11 : vector<8x1xf32> to vector<1x1x8x1xf32>
    tpu.vector_store %arg5[%c0_10, %c0_11, %c0_12, %c0_13], %14 {strides = array<i32>} : memref<1x1x8x1xf32, #tpu.memory_space<vmem>>, vector<1x1x8x1xf32>,
    return
  }
  func.func @transform_0(%arg0: i32, %arg1: i32) -> (i32, i32, i32) {
    %c0_i32 = arith.constant 0 : i32
    %c0_i32_0 = arith.constant 0 : i32
    return %arg0, %c0_i32, %arg1 : i32, i32, i32
  }
  func.func @transform_1(%arg0: i32, %arg1: i32) -> (i32, i32) {
    %c0_i32 = arith.constant 0 : i32
    %c0_i32_0 = arith.constant 0 : i32
    %c0_i32_1 = arith.constant 0 : i32
    return %c0_i32, %c0_i32_0 : i32, i32
  }
  func.func @transform_2(%arg0: i32, %arg1: i32) -> (i32, i32, i32, i32) {
    %c0_i32 = arith.constant 0 : i32
    %c0_i32_0 = arith.constant 0 : i32
    %c0_i32_1 = arith.constant 0 : i32
    return %arg0, %arg1, %c0_i32, %c0_i32_0 : i32, i32, i32, i32
  }
  func.func @transform_3(%arg0: i32, %arg1: i32) -> (i32, i32, i32, i32) {
    %c0_i32 = arith.constant 0 : i32
    %c0_i32_0 = arith.constant 0 : i32
    %c0_i32_1 = arith.constant 0 : i32
    return %arg0, %arg1, %c0_i32, %c0_i32_0 : i32, i32, i32, i32
  }
}

</mosaic_0001>

<bundles_post_ra>
// kernel: tpu_custom_call.1
= control target key start
LH: loop header
LB: loop body
LE: loop exit
PB: predicated region body
PF: predicated region fallthrough
CT: control target
= control target key end

     0   :  { %9 = vsyncpa [#allocation3], 0  ;;  %s762_s0 = inlined_call_operand.hbm [shape: f32[2,4,256], index: 0, kind: input, shape index: {}]   ;;  %s763_s1 = inlined_call_operand.vmem [shape: f32[8,4], index: 1, kind: input, shape index: {}]   ;;  %s764_s2 = inlined_call_operand.vmem [shape: f32[2,1,8,1], index: 2, kind: output, shape index: {0}]   ;;  %s765_s3 = inlined_call_operand.vmem [shape: f32[2,1,8,1], index: 3, kind: output, shape index: {1}]  }
   0x1   :  { %11 = vsyncpa [#allocation3 + $0x1], 0  ;;  %s631_s12 = smov 0   ;;  %s633_s13 = smov 0  }
   0x2   :  { %s635_s14 = smov 0   ;;  %s637_s15 = smov 0  }
   0x3   :  { %s639_s16 = smov 0   ;;  %s641_s17 = smov 0  }
   0x4 LB: > { %s453_s18 = sadd.s32 4294967295, %s607_s17   ;;  %s29_s19 = sadd.s32 1, %s603_s16  ;;  %s607_s17 = sphi %s641_s17, %s17_s17   ;;  %s603_s16 = sphi %s639_s16, %s775_s16   ;;  %s599_s15 = sphi %s637_s15, %s774_s15   ;;  %s595_s14 = sphi %s635_s14, %s773_s14   ;;  %s591_s13 = sphi %s633_s13, %s772_s13   ;;  %s587_s12 = sphi %s631_s12, %s771_s12  }
   0x5   : > { %p31_p0 = scmp.ge.s32.totalorder %s29_s19, 2  ;;  %s38_s20 = sadd.s32 1, %s595_s14 }
   0x6   : > { %p45_p1 = scmp.ne.s32.totalorder %s595_s14, %s591_s13  ;;  %p46_p2 = scmp.eq.s32.totalorder %s607_s17, 0 }
   0x7   : > { %s777_s19 = smov (%p31_p0, %s29_s19), 0  ;;  %p51_p4 = scmp.ne.s32.totalorder %s591_s13, %s587_s12 }
   0x8   : > { %p667_p3 = por %p46_p2, %p45_p1  ;;  %s33_s22 = ssub.s32 %s603_s16, %s777_s19 }
   0x9   : > { %p52_p5 = scmp.eq.s32.totalorder %s453_s18, 0  ;;  %p36_p6 = scmp.eq.s32.totalorder %s33_s22, 0 }
   0xa   : > { %p476_p8 = scmp.lt.s32.totalorder %s607_s17, 2  ;;  %s155_s25 = sand.u32 1, %s595_s14  }
   0xb   : > { %p674_p7 = por %p52_p5, %p51_p4  ;;  %s469_s26 = sshll.u32 %s603_s16, 7 }
   0xc   : > { %s680_s24 = scalar_select %p36_p6, %s595_s14, %s38_s20  }
   0xd   : > { %s457_s27 = sshll.u32 %s155_s25, 3  ;;  %s687_s30 = scalar_lea.hbm %s762_s0, %s469_s26 }
   0xe   : > { %s159_s4 = scalar_lea.vmem [#allocation2], %s457_s27  ;;  %p691_p9 = pnand %p476_p8, %p667_p3 }
   0xf   : > { %s169_s5 = sshll.u32 %s159_s4, 4  ;;  %s156_s7 = scalar_lea.sflag [#allocation3], %s155_s25  ;;  %s695_s5 = int_to_ptr.vmem [resolvable:$true] %s169_s5 }
  0x10   : > { %s527_s8 = scalar_lea.hbm %s687_s30, 128  ;;  %p529_p13 = pneg %p691_p9 }
  0x11   : > { %p528_p12 = scmp.ne.s32.totalorder %s687_s30, %s527_s8  ;;  %s532_s11 = scalar_lea.hbm %s762_s0, 256 }
  0x12   : > { %p533_p2 = scmp.lt.u32.totalorder %s687_s30, %s762_s0  ;;  %p534_p3 = scmp.lt.u32.totalorder %s532_s11, %s527_s8 }
  0x13   : > { %p530_p0 = pnand %p529_p13, %p528_p12  ;;  %p536_p5 = scmp.lt.u32.totalorder %s527_s8, %s687_s30 }
  0x14   : > { %p535_p4 = por %p534_p3, %p533_p2 }
  0x15   : > { %p531_p1 = pneg %p530_p0 }
  0x16   : > { %p537_p6 = por %p536_p5, %p535_p4 }
  0x18   : > { %p538_p8 = pnand %p537_p6, %p531_p1 }
  0x1a   : > { %541 = shalt.err (!%p538_p8)
}
  0x1b   : > { %s542_s20 = scalar_lea.vmem %s695_s5, 128  ;;  %s609_s21 = smov [#allocation2]  }
  0x1c   : > { %p543_p12 = scmp.ne.s32.totalorder %s695_s5, %s542_s20  ;;  %s547_s22 = sshll.u32 %s609_s21, 4  ;;  %s548_s22 = int_to_ptr.vmem [resolvable:$false] %s547_s22 }
  0x1d   : > { %s549_s25 = scalar_lea.vmem %s548_s22, 256  ;;  %p550_p11 = scmp.lt.s32.totalorder %s695_s5, %s548_s22 }
  0x1e   : > { %p545_p0 = pnand %p543_p12, %p529_p13  ;;  %p551_p2 = scmp.lt.s32.totalorder %s549_s25, %s542_s20 }
  0x20   : > { %p546_p10 = pneg %p545_p0  ;;  %p552_p3 = por %p551_p2, %p550_p11 }
  0x22   : > { %p553_p4 = pnand %p552_p3, %p546_p10 }
  0x24   : > { %556 = shalt.err (!%p553_p4)
}
  0x25   : > { %475 = dma.hbm_to_vmem [thread:$0]  (!%p691_p9), %s687_s30, 128, %s695_s5, %s156_s7  }
  0x26   : > { %p769_p1 = scmp.lt.s32.totalorder %s607_s17, 3  ;;  %p770_p5 = scmp.ge.s32.totalorder %s607_s17, 1 }
  0x28   : > { %p175_p13 = pnand %p770_p5, %p769_p1 }
  0x29   : > { %s180_s26 = sand.u32 (!%p175_p13), 1, %s591_s13  }
  0x2a   : > { %178 = sbr.rel (%p175_p13) target bundleno = 417 (0x1a1), region = 28  ;;  %s461_s27 = sshll.u32 (!%p175_p13), %s180_s26, 3 }
  0x2b   : > { %s181_s28 = scalar_lea.sflag (!%p175_p13), [#allocation3], %s180_s26  ;;  %s184_s29 = scalar_lea.vmem (!%p175_p13), [#allocation2], %s461_s27 }
  0x31   : > { %582 = dma.done.wait (%p674_p7), %s181_s28, 128  }
  0x32   : > { %584 = vsyncadd (%p674_p7), %s181_s28, 4294967168  ;;  %v610_v0 = vmov 0.0   ;;  %v231_v1 = vld [vmem:[%s184_s29] sm:$0xff]  ;;  %vm239_vm0 = vcmask 1043456   ;;  %vm235_vm1 = vcmask 31744   ;;  %p217_p7 = scmp.lt.s32.totalorder %s599_s15, 1 }
  0x33   : > { %308 = vmatprep.mubr.f32.mxu0 %v610_v0  ;;  %v234_v2 = vcombine.high %v231_v1, %v231_v1  ;;  %v232_v3 = vld [vmem:[%s763_s1] sm:$0xff]  ;;  %vm318_vm2 = vcmask 7168  }
  0x34   : > { %s779_s15 = smov (!%p217_p7, %s599_s15), 1 }
  0x35   : > { %464 = vmatprep.subr.msk.mxu0 %vm239_vm0, %v234_v2  ;;  %s462_s23 = sshll.u32 %s779_s15, 3 }
  0x36   : > { %465 = vmatpush1.msk.msra.mxu0 %vm239_vm0, %v231_v1  ;;  %s223_s7 = scalar_lea.vmem %s764_s2, %s462_s23  ;;  %s230_s10 = scalar_lea.vmem %s765_s3, %s462_s23 }
  0x37   : > { %466 = vmatmul.mubr.msk.f32.vlgmr.msra.gmra.mrb[0].mxu0 %vm235_vm1, %v232_v3 }
 0x10a   : > { %v310_v4 = vpop.f32.mrb[0].mxu0 }
 0x10b   : > { %v320_v5 = vmul.f32 %v310_v4, %v310_v4  ;;  %v312_v6 = vpop.f32.mrb[1].mxu0 }
 0x10c   : > { %v321_v7 = vmul.f32 %v312_v6, %v312_v6  ;;  %v315_v8 = vadd.f32 %v312_v6, %v310_v4 }
 0x10e   : > { %316 = vadd.xlane.f32.xlu0 %v315_v8  ;;  %v322_v9 = vadd.f32 %v321_v7, %v320_v5 }
 0x112   : > { %323 = vadd.xlane.f32.xlu0 %v322_v9 }
 0x19b   : > { %v317_v10 = vpop.xlane.xlu0 %316 }
 0x19c   : > { %319 = vst.msk [vmem:[%s223_s7] sm:$0xff] %vm318_vm2, %v317_v10 }
 0x19f   : > { %v324_v11 = vpop.xlane.xlu0 %323 }
 0x1a0   : > { %325 = vst.msk [vmem:[%s230_s10] sm:$0xff] %vm318_vm2, %v324_v11 }
 0x1a1 PF: > { %s17_s17 = sadd.s32 1, %s607_s17   ;;  %s771_s12 = smov %s591_s13 }
 0x1a2   : > { %p14_p9 = scmp.ge.s32.totalorder %s17_s17, 4   ;;  %s772_s13 = smov %s595_s14 }
 0x1a3   : > { %s773_s14 = smov %s680_s24  ;;  %s774_s15 = smov %s603_s16 }
 0x1a4   : > { %s775_s16 = smov %s777_s19  ;;  %16 = sbr.rel (!%p14_p9) target bundleno = 4 (0x4), region = 80 }
 0x1ab   :  { %371 = vsyncpa [#allocation3], 1 }
 0x1ac   :  { %373 = vsyncpa [#allocation3 + $0x1], 1 }

</bundles_post_ra>
